<compile_context>
chip_gen: v7x
topology: tpu7x:2x2x1
jax: 0.10.0
libtpu: 0.0.40
codegen_flags: <defaults>
</compile_context>

<pallas_src>
import functools

import jax
import jax.numpy as jnp
from jax.experimental import pallas as pl
from jax.experimental.pallas import tpu as pltpu


def _round_up(x, m):
    return (x + m - 1) // m * m


def _cdiv(a, b):
    return (a + b - 1) // b


# ---------------------------------------------------------------------------
# Kernel
# ---------------------------------------------------------------------------
def dueling_q_kernel(num_actions,
                     x_ref,
                     w1_ref, b1_ref,
                     w2_ref, b2_ref,
                     wh3_ref, bh3_ref,
                     wh4_ref, bh4_ref,
                     out_ref):
    """One batch tile of the full Dueling-DQN MLP.

    x_ref:   (TILE_B, num_obs) f32 (unpadded lane dim; cast to compute dtype here)
    w*_ref:  lane-padded weights in compute dtype (bf16 or f32)
    b*_ref:  (1, N) biases, f32
    out_ref: (TILE_B, OUT_COLS) f32; columns 0..A-1 hold Q, column A is garbage.
    """
    cd = w1_ref.dtype  # matmul input dtype (bf16 or f32); accumulation is f32

    x = x_ref[...].astype(cd)

    # fc1 + ReLU
    h1 = jnp.dot(x, w1_ref[...], preferred_element_type=jnp.float32) + b1_ref[...]
    h1 = jnp.maximum(h1, 0.0).astype(cd)

    # fc2 + ReLU
    h2 = jnp.dot(h1, w2_ref[...], preferred_element_type=jnp.float32) + b2_ref[...]
    h2 = jnp.maximum(h2, 0.0).astype(cd)

    # fused head-3: [fc3_1 | fc3_2] + ReLU
    h3 = jnp.dot(h2, wh3_ref[...], preferred_element_type=jnp.float32) + bh3_ref[...]
    h3 = jnp.maximum(h3, 0.0).astype(cd)

    # fused head-4 (block-diagonal): columns 0..A-1 = advantage, column A = value,
    # remaining columns are exact zeros (zero weight + zero bias).
    va = jnp.dot(h3, wh4_ref[...], preferred_element_type=jnp.float32) + bh4_ref[...]

    # Dueling combine.  Padding lanes of va are exactly zero, so
    # sum(va) = adv_sum + val with no masking needed.
    val = va[:, num_actions:num_actions + 1]
    total = jnp.sum(va, axis=1, keepdims=True)
    adv_mean = (total - val) * (1.0 / num_actions)

    # Columns 0..A-1 of the output hold Q = val + adv - mean(adv); the rest is
    # garbage and is sliced off outside the kernel.
    out_ref[...] = val + va - adv_mean


# ---------------------------------------------------------------------------
# Parameter fusion + lane padding (done once, outside the kernel)
# ---------------------------------------------------------------------------
def fuse_and_pad_params(params, num_obs, num_actions, compute_dtype=jnp.bfloat16):
    """Fuse the two dueling heads; pad hidden lane dims to 128, output lanes to 8."""
    fc1 = params["w1"].shape[1]
    fc2 = params["w2"].shape[1]
    h31 = params["w31"].shape[1]
    h32 = params["w32"].shape[1]

    fc1_pad = _round_up(fc1, 128)
    fc2_pad = _round_up(fc2, 128)
    h3_pad = _round_up(h31 + h32, 128)
    out_cols = max(8, _round_up(num_actions + 1, 8))   # narrow output slab

    def pad2(a, rows, cols):
        return jnp.pad(a, ((0, rows - a.shape[0]), (0, cols - a.shape[1])))

    # w1 keeps its true (num_obs) row count: the input is NOT lane-padded.
    w1 = pad2(params["w1"], num_obs, fc1_pad)
    b1 = pad2(params["b1"], 1, fc1_pad)
    w2 = pad2(params["w2"], fc1_pad, fc2_pad)
    b2 = pad2(params["b2"], 1, fc2_pad)

    # Fused head-3: columns [fc3_1 | fc3_2], zero-padded.
    wh3 = pad2(jnp.concatenate([params["w31"], params["w32"]], axis=1), fc2_pad, h3_pad)
    bh3 = pad2(jnp.concatenate([params["b31"], params["b32"]], axis=1), 1, h3_pad)

    # Fused head-4: block-diagonal weight producing [adv | val | zero-pad].
    wh4 = jnp.zeros((h3_pad, out_cols), jnp.float32)
    wh4 = wh4.at[h31:h31 + h32, :num_actions].set(params["w42"])          # advantage
    wh4 = wh4.at[:h31, num_actions:num_actions + 1].set(params["w41"])    # value
    bh4 = jnp.zeros((1, out_cols), jnp.float32)
    bh4 = bh4.at[:, :num_actions].set(params["b42"])
    bh4 = bh4.at[:, num_actions:num_actions + 1].set(params["b41"])

    cd = compute_dtype
    return {
        "w1": w1.astype(cd), "b1": b1.astype(jnp.float32),
        "w2": w2.astype(cd), "b2": b2.astype(jnp.float32),
        "wh3": wh3.astype(cd), "bh3": bh3.astype(jnp.float32),
        "wh4": wh4.astype(cd), "bh4": bh4.astype(jnp.float32),
    }


# ---------------------------------------------------------------------------
# Host wrapper
# ---------------------------------------------------------------------------
@functools.partial(jax.jit, static_argnames=("num_actions", "tile_b_max"))
def dueling_q_forward(state, fused, *, num_actions, tile_b_max=4096):
    """state: (B, num_obs) f32.  fused: output of fuse_and_pad_params."""
    B, num_obs = state.shape
    fc1_pad = fused["w1"].shape[1]
    fc2_pad = fused["w2"].shape[1]
    h3_pad = fused["wh3"].shape[1]
    out_cols = fused["wh4"].shape[1]

    # Batch tiling: big tiles to amortize the ~0.35 us per-grid-step overhead;
    # when B is small, split into 2 tiles so the "parallel" axis can feed both
    # TensorCores on v7x (no-op on v5e/v6e).
    if B >= 2 * tile_b_max:
        tile_b = tile_b_max
    else:
        tile_b = max(8, _round_up(_cdiv(B, 2), 8))
    padded_b = _round_up(B, tile_b)

    # Only the batch dim is padded; the lane (obs) dim stays at its true size.
    x = state if padded_b == B else jnp.pad(state, ((0, padded_b - B), (0, 0)))

    kernel = functools.partial(dueling_q_kernel, num_actions)

    def resident(shape):  # weights/biases: same block every grid step -> VMEM-resident
        return pl.BlockSpec(shape, lambda i: (0, 0))

    out_padded = pl.pallas_call(
        kernel,
        out_shape=jax.ShapeDtypeStruct((padded_b, out_cols), jnp.float32),
        grid_spec=pltpu.PrefetchScalarGridSpec(
            num_scalar_prefetch=0,
            grid=(padded_b // tile_b,),
            in_specs=[
                # state tile: last dim == full array dim (num_obs), so no 128 pad needed
                pl.BlockSpec((tile_b, num_obs), lambda i: (i, 0)),
                resident((num_obs, fc1_pad)), resident((1, fc1_pad)),
                resident((fc1_pad, fc2_pad)), resident((1, fc2_pad)),
                resident((fc2_pad, h3_pad)), resident((1, h3_pad)),
                resident((h3_pad, out_cols)), resident((1, out_cols)),
            ],
            out_specs=pl.BlockSpec((tile_b, out_cols), lambda i: (i, 0)),
        ),
        compiler_params=pltpu.CompilerParams(
            dimension_semantics=("parallel",),       # shard batch tiles across TCs on v7x
            vmem_limit_bytes=40 * 1024 * 1024,       # > v5e 16 MiB default, < v7x 64 MiB phys
        ),
    )(x,
      fused["w1"], fused["b1"],
      fused["w2"], fused["b2"],
      fused["wh3"], fused["bh3"],
      fused["wh4"], fused["bh4"])

    # Q-values live in columns 0 .. num_actions-1 of the fused [adv | val] slab.
    return out_padded[:B, :num_actions]


# ---------------------------------------------------------------------------
# Init + pure-JAX reference (matches the PyTorch forward)
# ---------------------------------------------------------------------------
def init_params(key, num_obs, num_actions, fc1_size=64, fc2_size=64):
    """PyTorch-Linear-style init: U(-1/sqrt(fan_in), 1/sqrt(fan_in))."""
    fc3_1_size = fc3_2_size = 32

    def linear(key, fan_in, fan_out):
        kw, kb = jax.random.split(key)
        bound = 1.0 / jnp.sqrt(jnp.float32(fan_in))
        w = jax.random.uniform(kw, (fan_in, fan_out), jnp.float32, -bound, bound)
        b = jax.random.uniform(kb, (1, fan_out), jnp.float32, -bound, bound)
        return w, b

    keys = jax.random.split(key, 6)
    w1, b1 = linear(keys[0], num_obs, fc1_size)
    w2, b2 = linear(keys[1], fc1_size, fc2_size)
    w31, b31 = linear(keys[2], fc2_size, fc3_1_size)
    w41, b41 = linear(keys[3], fc3_1_size, 1)
    w32, b32 = linear(keys[4], fc2_size, fc3_2_size)
    w42, b42 = linear(keys[5], fc3_2_size, num_actions)
    return {
        "w1": w1, "b1": b1, "w2": w2, "b2": b2,
        "w31": w31, "b31": b31, "w41": w41, "b41": b41,
        "w32": w32, "b32": b32, "w42": w42, "b42": b42,
    }


def reference_forward(state, p):
    h1 = jnp.maximum(state @ p["w1"] + p["b1"], 0.0)
    h2 = jnp.maximum(h1 @ p["w2"] + p["b2"], 0.0)
    v = jnp.maximum(h2 @ p["w31"] + p["b31"], 0.0)
    val = v @ p["w41"] + p["b41"]
    a = jnp.maximum(h2 @ p["w32"] + p["b32"], 0.0)
    adv = a @ p["w42"] + p["b42"]
    return val + adv - jnp.mean(adv, axis=1, keepdims=True)


if __name__ == "__main__":
    key = jax.random.PRNGKey(0)
    k_state, k_params, k_big = jax.random.split(key, 3)

    batch = 2
    num_obs = 8
    num_actions = 4

    state = jax.random.normal(k_state, (batch, num_obs), jnp.float32)
    params = init_params(k_params, num_obs, num_actions)
    ref = reference_forward(state, params)

    # f32 matmul path: tight check against the pure-JAX reference.
    fused_f32 = fuse_and_pad_params(params, num_obs, num_actions, jnp.float32)
    out_f32 = jax.block_until_ready(
        dueling_q_forward(state, fused_f32, num_actions=num_actions))
    assert out_f32.shape == (batch, num_actions)
    assert jnp.allclose(out_f32, ref, atol=1e-4, rtol=1e-4)

    # bf16 matmul path (f32 accumulate): MXU-native dtype, loose tolerance.
    fused_bf16 = fuse_and_pad_params(params, num_obs, num_actions, jnp.bfloat16)
    out_bf16 = jax.block_until_ready(
        dueling_q_forward(state, fused_bf16, num_actions=num_actions))
    assert out_bf16.shape == (batch, num_actions)
    assert jnp.allclose(out_bf16, ref, atol=3e-2, rtol=3e-2)

    # Larger, non-tile-aligned batch: exercises multi-step grid + batch padding.
    big_b = 300
    big_state = jax.random.normal(k_big, (big_b, num_obs), jnp.float32)
    big_ref = reference_forward(big_state, params)
    big_out = jax.block_until_ready(
        dueling_q_forward(big_state, fused_f32, num_actions=num_actions))
    assert big_out.shape == (big_b, num_actions)
    assert jnp.allclose(big_out, big_ref, atol=1e-4, rtol=1e-4)

    print("KERNEL_OK")
</pallas_src>

<mosaic_0001>
module attributes {stable_mosaic.version = 11 : i64} {
  func.func @dueling_q_kernel(%arg0: i32, %arg1: memref<8x8xf32, #tpu.memory_space<vmem>>, %arg2: memref<8x128xf32, #tpu.memory_space<vmem>>, %arg3: memref<1x128xf32, #tpu.memory_space<vmem>>, %arg4: memref<128x128xf32, #tpu.memory_space<vmem>>, %arg5: memref<1x128xf32, #tpu.memory_space<vmem>>, %arg6: memref<128x128xf32, #tpu.memory_space<vmem>>, %arg7: memref<1x128xf32, #tpu.memory_space<vmem>>, %arg8: memref<128x8xf32, #tpu.memory_space<vmem>>, %arg9: memref<1x8xf32, #tpu.memory_space<vmem>>, %arg10: memref<8x8xf32, #tpu.memory_space<vmem>>) attributes {dimension_semantics = [#tpu.dimension_semantics<parallel>], iteration_bounds = array<i64: 1>, scalar_prefetch = 0 : i64, scratch_operands = 0 : i64, tpu.core_type = #tpu.core_type<tc>, window_params = [{transform_indices = @transform_0, window_bounds = array<i64: 8, 8>}, {pipeline_mode = #tpu.pipeline_mode<synchronous>, transform_indices = @transform_1, window_bounds = array<i64: 8, 128>}, {pipeline_mode = #tpu.pipeline_mode<synchronous>, transform_indices = @transform_2, window_bounds = array<i64: 1, 128>}, {pipeline_mode = #tpu.pipeline_mode<synchronous>, transform_indices = @transform_3, window_bounds = array<i64: 128, 128>}, {pipeline_mode = #tpu.pipeline_mode<synchronous>, transform_indices = @transform_4, window_bounds = array<i64: 1, 128>}, {pipeline_mode = #tpu.pipeline_mode<synchronous>, transform_indices = @transform_5, window_bounds = array<i64: 128, 128>}, {pipeline_mode = #tpu.pipeline_mode<synchronous>, transform_indices = @transform_6, window_bounds = array<i64: 1, 128>}, {pipeline_mode = #tpu.pipeline_mode<synchronous>, transform_indices = @transform_7, window_bounds = array<i64: 128, 8>}, {pipeline_mode = #tpu.pipeline_mode<synchronous>, transform_indices = @transform_8, window_bounds = array<i64: 1, 8>}, {transform_indices = @transform_9, window_bounds = array<i64: 8, 8>}]} {
    %c0 = arith.constant 0 : index
    %c0_0 = arith.constant 0 : index
    %0 = vector.load %arg1[%c0, %c0_0] : memref<8x8xf32, #tpu.memory_space<vmem>>, vector<8x8xf32>
    %c0_1 = arith.constant 0 : index
    %c0_2 = arith.constant 0 : index
    %1 = vector.load %arg2[%c0_1, %c0_2] : memref<8x128xf32, #tpu.memory_space<vmem>>, vector<8x128xf32>
    %cst = arith.constant dense<0.000000e+00> : vector<8x128xf32>
    %2 = tpu.matmul %0, %1, %cst {dimension_numbers = #tpu.dot_dimension_numbers<[1], [0], [0], [1], [0, 0, 1, 1], [], []>} : vector<8x8xf32>, vector<8x128xf32>, vector<8x128xf32> -> vector<8x128xf32>
    %c0_3 = arith.constant 0 : index
    %c0_4 = arith.constant 0 : index
    %3 = vector.load %arg3[%c0_3, %c0_4] : memref<1x128xf32, #tpu.memory_space<vmem>>, vector<1x128xf32>
    %4 = vector.broadcast %3 : vector<1x128xf32> to vector<8x128xf32>
    %5 = arith.addf %2, %4 : vector<8x128xf32>
    %cst_5 = arith.constant 0.000000e+00 : f32
    %6 = vector.broadcast %cst_5 : f32 to vector<8x128xf32>
    %7 = arith.maximumf %5, %6 : vector<8x128xf32>
    %c0_6 = arith.constant 0 : index
    %c0_7 = arith.constant 0 : index
    %8 = vector.load %arg4[%c0_6, %c0_7] : memref<128x128xf32, #tpu.memory_space<vmem>>, vector<128x128xf32>
    %cst_8 = arith.constant dense<0.000000e+00> : vector<8x128xf32>
    %9 = tpu.matmul %7, %8, %cst_8 {dimension_numbers = #tpu.dot_dimension_numbers<[1], [0], [0], [1], [0, 0, 1, 1], [], []>} : vector<8x128xf32>, vector<128x128xf32>, vector<8x128xf32> -> vector<8x128xf32>
    %c0_9 = arith.constant 0 : index
    %c0_10 = arith.constant 0 : index
    %10 = vector.load %arg5[%c0_9, %c0_10] : memref<1x128xf32, #tpu.memory_space<vmem>>, vector<1x128xf32>
    %11 = vector.broadcast %10 : vector<1x128xf32> to vector<8x128xf32>
    %12 = arith.addf %9, %11 : vector<8x128xf32>
    %cst_11 = arith.constant 0.000000e+00 : f32
    %13 = vector.broadcast %cst_11 : f32 to vector<8x128xf32>
    %14 = arith.maximumf %12, %13 : vector<8x128xf32>
    %c0_12 = arith.constant 0 : index
    %c0_13 = arith.constant 0 : index
    %15 = vector.load %arg6[%c0_12, %c0_13] : memref<128x128xf32, #tpu.memory_space<vmem>>, vector<128x128xf32>
    %cst_14 = arith.constant dense<0.000000e+00> : vector<8x128xf32>
    %16 = tpu.matmul %14, %15, %cst_14 {dimension_numbers = #tpu.dot_dimension_numbers<[1], [0], [0], [1], [0, 0, 1, 1], [], []>} : vector<8x128xf32>, vector<128x128xf32>, vector<8x128xf32> -> vector<8x128xf32>
    %c0_15 = arith.constant 0 : index
    %c0_16 = arith.constant 0 : index
    %17 = vector.load %arg7[%c0_15, %c0_16] : memref<1x128xf32, #tpu.memory_space<vmem>>, vector<1x128xf32>
    %18 = vector.broadcast %17 : vector<1x128xf32> to vector<8x128xf32>
    %19 = arith.addf %16, %18 : vector<8x128xf32>
    %cst_17 = arith.constant 0.000000e+00 : f32
    %20 = vector.broadcast %cst_17 : f32 to vector<8x128xf32>
    %21 = arith.maximumf %19, %20 : vector<8x128xf32>
    %c0_18 = arith.constant 0 : index
    %c0_19 = arith.constant 0 : index
    %22 = vector.load %arg8[%c0_18, %c0_19] : memref<128x8xf32, #tpu.memory_space<vmem>>, vector<128x8xf32>
    %cst_20 = arith.constant dense<0.000000e+00> : vector<8x8xf32>
    %23 = tpu.matmul %21, %22, %cst_20 {dimension_numbers = #tpu.dot_dimension_numbers<[1], [0], [0], [1], [0, 0, 1, 1], [], []>} : vector<8x128xf32>, vector<128x8xf32>, vector<8x8xf32> -> vector<8x8xf32>
    %c0_21 = arith.constant 0 : index
    %c0_22 = arith.constant 0 : index
    %24 = vector.load %arg9[%c0_21, %c0_22] : memref<1x8xf32, #tpu.memory_space<vmem>>, vector<1x8xf32>
    %25 = vector.broadcast %24 : vector<1x8xf32> to vector<8x8xf32>
    %26 = arith.addf %23, %25 : vector<8x8xf32>
    %27 = vector.extract_strided_slice %26 {offsets = [0, 4], sizes = [8, 1], strides = [1, 1]} : vector<8x8xf32> to vector<8x1xf32>
    %cst_23 = arith.constant dense<0.000000e+00> : vector<8xf32>
    %28 = vector.multi_reduction <add>, %26, %cst_23 [1] : vector<8x8xf32> to vector<8xf32>
    %29 = vector.shape_cast %28 : vector<8xf32> to vector<8x1xf32>
    %30 = arith.subf %29, %27 : vector<8x1xf32>
    %cst_24 = arith.constant 2.500000e-01 : f32
    %31 = vector.broadcast %cst_24 : f32 to vector<8x1xf32>
    %32 = arith.mulf %30, %31 : vector<8x1xf32>
    %33 = vector.broadcast %27 : vector<8x1xf32> to vector<8x8xf32>
    %34 = arith.addf %33, %26 : vector<8x8xf32>
    %35 = vector.broadcast %32 : vector<8x1xf32> to vector<8x8xf32>
    %36 = arith.subf %34, %35 : vector<8x8xf32>
    %c0_25 = arith.constant 0 : index
    %c0_26 = arith.constant 0 : index
    %37 = vector.load %arg10[%c0_25, %c0_26] : memref<8x8xf32, #tpu.memory_space<vmem>>, vector<8x8xf32>
    tpu.vector_store %arg10[%c0_25, %c0_26], %36 {strides = array<i32>} : memref<8x8xf32, #tpu.memory_space<vmem>>, vector<8x8xf32>,
    return
  }
  func.func @transform_0(%arg0: i32) -> (i32, i32) {
    %c0_i32 = arith.constant 0 : i32
    %c0_i32_0 = arith.constant 0 : i32
    return %arg0, %c0_i32 : i32, i32
  }
  func.func @transform_1(%arg0: i32) -> (i32, i32) {
    %c0_i32 = arith.constant 0 : i32
    %c0_i32_0 = arith.constant 0 : i32
    %c0_i32_1 = arith.constant 0 : i32
    return %c0_i32, %c0_i32_0 : i32, i32
  }
  func.func @transform_2(%arg0: i32) -> (i32, i32) {
    %c0_i32 = arith.constant 0 : i32
    %c0_i32_0 = arith.constant 0 : i32
    %c0_i32_1 = arith.constant 0 : i32
    return %c0_i32, %c0_i32_0 : i32, i32
  }
  func.func @transform_3(%arg0: i32) -> (i32, i32) {
    %c0_i32 = arith.constant 0 : i32
    %c0_i32_0 = arith.constant 0 : i32
    %c0_i32_1 = arith.constant 0 : i32
    return %c0_i32, %c0_i32_0 : i32, i32
  }
  func.func @transform_4(%arg0: i32) -> (i32, i32) {
    %c0_i32 = arith.constant 0 : i32
    %c0_i32_0 = arith.constant 0 : i32
    %c0_i32_1 = arith.constant 0 : i32
    return %c0_i32, %c0_i32_0 : i32, i32
  }
  func.func @transform_5(%arg0: i32) -> (i32, i32) {
    %c0_i32 = arith.constant 0 : i32
    %c0_i32_0 = arith.constant 0 : i32
    %c0_i32_1 = arith.constant 0 : i32
    return %c0_i32, %c0_i32_0 : i32, i32
  }
  func.func @transform_6(%arg0: i32) -> (i32, i32) {
    %c0_i32 = arith.constant 0 : i32
    %c0_i32_0 = arith.constant 0 : i32
    %c0_i32_1 = arith.constant 0 : i32
    return %c0_i32, %c0_i32_0 : i32, i32
  }
  func.func @transform_7(%arg0: i32) -> (i32, i32) {
    %c0_i32 = arith.constant 0 : i32
    %c0_i32_0 = arith.constant 0 : i32
    %c0_i32_1 = arith.constant 0 : i32
    return %c0_i32, %c0_i32_0 : i32, i32
  }
  func.func @transform_8(%arg0: i32) -> (i32, i32) {
    %c0_i32 = arith.constant 0 : i32
    %c0_i32_0 = arith.constant 0 : i32
    %c0_i32_1 = arith.constant 0 : i32
    return %c0_i32, %c0_i32_0 : i32, i32
  }
  func.func @transform_9(%arg0: i32) -> (i32, i32) {
    %c0_i32 = arith.constant 0 : i32
    %c0_i32_0 = arith.constant 0 : i32
    return %arg0, %c0_i32 : i32, i32
  }
}

</mosaic_0001>

<bundles_post_ra>
// kernel: dueling_q_forward.1
= control target key start
LH: loop header
LB: loop body
LE: loop exit
PB: predicated region body
PF: predicated region fallthrough
CT: control target
= control target key end

     0   :  { %14 = vsyncpa [#allocation3], 0  ;;  %s707_s30 = smov [#allocation2]   ;;  %s929_s0 = inlined_call_operand.vmem [shape: f32[8,8], index: 0, kind: input, shape index: {}]   ;;  %s930_s1 = inlined_call_operand.vmem [shape: f32[8,128], index: 1, kind: input, shape index: {}]   ;;  %s931_s2 = inlined_call_operand.vmem [shape: f32[1,128], index: 2, kind: input, shape index: {}]   ;;  %s932_s3 = inlined_call_operand.vmem [shape: f32[128,128], index: 3, kind: input, shape index: {}]   ;;  %s933_s4 = inlined_call_operand.vmem [shape: f32[1,128], index: 4, kind: input, shape index: {}]   ;;  %s934_s5 = inlined_call_operand.hbm [shape: f32[128,128], index: 5, kind: input, shape index: {}]   ;;  %s935_s6 = inlined_call_operand.vmem [shape: f32[1,128], index: 6, kind: input, shape index: {}]   ;;  %s936_s7 = inlined_call_operand.vmem [shape: f32[128,8], index: 7, kind: input, shape index: {}]   ;;  %s937_s8 = inlined_call_operand.vmem [shape: f32[1,8], index: 8, kind: input, shape index: {}]   ;;  %s938_s9 = inlined_call_operand.vmem [shape: f32[8,8], index: 9, kind: output, shape index: {}]  }
   0x1   :  { %s30_s10 = sshll.u32 %s707_s30, 4  ;;  %s683_s13 = scalar_lea.hbm %s934_s5, 2048  ;;  %s31_s10 = int_to_ptr.vmem [resolvable:$true] %s30_s10 }
   0x2   :  { %p684_p0 = scmp.ne.s32.totalorder %s934_s5, %s683_s13  ;;  %p687_p1 = scmp.lt.u32.totalorder %s683_s13, %s934_s5 }
   0x4   :  { %p689_p2 = pnand %p687_p1, %p684_p0 }
   0x6   :  { %692 = shalt.err (!%p689_p2)
}
   0x7   :  { %s693_s18 = scalar_lea.vmem %s31_s10, 2048  ;;  %p698_p4 = scmp.lt.s32.totalorder %s31_s10, %s31_s10 }
   0x8   :  { %p694_p3 = scmp.ne.s32.totalorder %s31_s10, %s693_s18  ;;  %p699_p5 = scmp.lt.s32.totalorder %s693_s18, %s693_s18 }
   0xa   :  { %p700_p6 = por %p699_p5, %p698_p4 }
   0xc   :  { %p701_p7 = pnand %p700_p6, %p694_p3 }
   0xe   :  { %704 = shalt.err (!%p701_p7)
}
   0xf   :  { %s708_s19 = smov 128   ;;  %s709_s20 = smov 8  }
  0x10   :  { %36 = dma.hbm_to_vmem [thread:$0]  %s934_s5, 2048, %s31_s10, [#allocation3], %s708_s19, %s708_s19, %s709_s20  }
  0x11   :  { %705 = dma.done.wait [#allocation3], 2048  }
  0x12   :  { %706 = vsyncadd [#allocation3], 4294965248  ;;  %v710_v0 = vmov 0.0   ;;  %vm711_vm0 = vmmov 0   ;;  %v712_v1 = vmov 0.0|0.0   ;;  %vm55_vm1 = vcmask 64512  }
  0x13   :  { %492 = vmatprep.subr.mxu0 %v710_v0  ;;  %494 = vmatprep.mubr.msk.f32.mxu0 %vm711_vm0, %v710_v0  ;;  %v47_v2 = vld [vmem:[%s930_s1] sm:$0xff]  ;;  %v131_v5 = vld [vmem:[%s932_s3 + $0x8] sm:$0xff]  ;;  %v132_v6 = vld [vmem:[%s932_s3 + $0x10] sm:$0xff] }
  0x14   :  { %602 = vmatprep.subr.bf16.mxu1 %v712_v1  ;;  %529 = vmatprep.mubr.msk.f32.mxu1 %vm711_vm0, %v710_v0  ;;  %v46_v3 = vld [vmem:[%s929_s0] sm:$0xff]  ;;  %v133_v7 = vld [vmem:[%s932_s3 + $0x18] sm:$0xff]  ;;  %v135_v11 = vld [vmem:[%s932_s3 + $0x28] sm:$0xff] }
  0x15   :  { %v130_v4 = vld [vmem:[%s932_s3] sm:$0xff]  ;;  %493 = vmatpush3.msra.mxu0 %v47_v2  ;;  %v606_v9 = vpack.c.bf16 %v133_v7, %v132_v6  ;;  %v136_v13 = vld [vmem:[%s932_s3 + $0x30] sm:$0xff]  ;;  %v137_v14 = vld [vmem:[%s932_s3 + $0x38] sm:$0xff] }
  0x16   :  { %495 = vmatmul.mubr.msk.f32.vlgmr.msra.gmra.mrb[0].mxu0 %vm55_vm1, %v46_v3  ;;  %v603_v8 = vpack.c.bf16 %v131_v5, %v130_v4  ;;  %626 = vmatprep.subr.bf16.mxu0 %v712_v1  ;;  %v134_v10 = vld [vmem:[%s932_s3 + $0x20] sm:$0xff]  ;;  %v612_v15 = vpack.c.bf16 %v137_v14, %v136_v13  ;;  %v139_v17 = vld [vmem:[%s932_s3 + $0x48] sm:$0xff]  ;;  %v140_v19 = vld [vmem:[%s932_s3 + $0x50] sm:$0xff] }
  0x17   :  { %564 = vmatprep.mubr.msk.f32.mxu0 %vm711_vm0, %v710_v0  ;;  %v609_v12 = vpack.c.bf16 %v135_v11, %v134_v10  ;;  %v138_v16 = vld [vmem:[%s932_s3 + $0x40] sm:$0xff]  ;;  %v141_v20 = vld [vmem:[%s932_s3 + $0x58] sm:$0xff]  ;;  %v143_v23 = vld [vmem:[%s932_s3 + $0x68] sm:$0xff] }
  0x18   :  { %604 = vmatpush3.bf16.msra.mxu1 %v603_v8  ;;  %v615_v18 = vpack.c.bf16 %v139_v17, %v138_v16  ;;  %v618_v21 = vpack.c.bf16 %v141_v20, %v140_v19  ;;  %v142_v22 = vld [vmem:[%s932_s3 + $0x60] sm:$0xff]  ;;  %v144_v25 = vld [vmem:[%s932_s3 + $0x70] sm:$0xff]  ;;  %v145_v26 = vld [vmem:[%s932_s3 + $0x78] sm:$0xff] }
  0x19   :  { %605 = vmatprep.subr.bf16.mxu1 %v712_v1  ;;  %v621_v24 = vpack.c.bf16 %v143_v23, %v142_v22  ;;  %v624_v27 = vpack.c.bf16 %v145_v26, %v144_v25  ;;  %v224_v28 = vld [vmem:[#allocation2] sm:$0xff]  ;;  %v225_v29 = vld [vmem:[#allocation2 + $0x8] sm:$0xff]  ;;  %v226_v30 = vld [vmem:[#allocation2 + $0x10] sm:$0xff] }
  0x1a   :  { %v627_v31 = vpack.c.bf16 %v225_v29, %v224_v28  ;;  %v227_v32 = vld [vmem:[#allocation2 + $0x18] sm:$0xff]  ;;  %v228_v34 = vld [vmem:[#allocation2 + $0x20] sm:$0xff]  ;;  %v229_v35 = vld [vmem:[#allocation2 + $0x28] sm:$0xff] }
  0x1b   :  { %v630_v33 = vpack.c.bf16 %v227_v32, %v226_v30  ;;  %v633_v36 = vpack.c.bf16 %v229_v35, %v228_v34  ;;  %v230_v37 = vld [vmem:[#allocation2 + $0x30] sm:$0xff]  ;;  %v231_v38 = vld [vmem:[#allocation2 + $0x38] sm:$0xff]  ;;  %v232_v40 = vld [vmem:[#allocation2 + $0x40] sm:$0xff] }
  0x1c   :  { %607 = vmatpush3.bf16.msra.mxu1 %v606_v9  ;;  %628 = vmatpush3.bf16.msra.mxu0 %v627_v31  ;;  %v636_v39 = vpack.c.bf16 %v231_v38, %v230_v37  ;;  %v233_v41 = vld [vmem:[#allocation2 + $0x48] sm:$0xff]  ;;  %v234_v43 = vld [vmem:[#allocation2 + $0x50] sm:$0xff]  ;;  %v235_v44 = vld [vmem:[#allocation2 + $0x58] sm:$0xff] }
  0x1d   :  { %608 = vmatprep.subr.bf16.mxu1 %v712_v1  ;;  %629 = vmatprep.subr.bf16.mxu0 %v712_v1  ;;  %v639_v42 = vpack.c.bf16 %v233_v41, %v232_v40  ;;  %v642_v45 = vpack.c.bf16 %v235_v44, %v234_v43  ;;  %v236_v46 = vld [vmem:[#allocation2 + $0x60] sm:$0xff]  ;;  %v237_v47 = vld [vmem:[#allocation2 + $0x68] sm:$0xff]  ;;  %v434_v49 = vld [vmem:[%s931_s2] ss:$0 sm:$0xff] }
  0x1e   :  { %v645_v48 = vpack.c.bf16 %v237_v47, %v236_v46  ;;  %v238_v54 = vld [vmem:[#allocation2 + $0x70] sm:$0xff]  ;;  %v239_v55 = vld [vmem:[#allocation2 + $0x78] sm:$0xff]  ;;  %v319_v58 = vld [vmem:[%s936_s7 + $0x8] sm:$0xff] }
  0x1f   :  { %v648_v56 = vpack.c.bf16 %v239_v55, %v238_v54  ;;  %v318_v57 = vld [vmem:[%s936_s7] sm:$0xff]  ;;  %v320_v59 = vld [vmem:[%s936_s7 + $0x10] sm:$0xff]  ;;  %v321_v61 = vld [vmem:[%s936_s7 + $0x18] sm:$0xff] }
  0x20   :  { %610 = vmatpush3.bf16.msra.mxu1 %v609_v12  ;;  %631 = vmatpush3.bf16.msra.mxu0 %v630_v33  ;;  %v651_v60 = vpack.c.bf16 %v319_v58, %v318_v57  ;;  %v654_v62 = vpack.c.bf16 %v321_v61, %v320_v59  ;;  %v322_v63 = vld [vmem:[%s936_s7 + $0x20] sm:$0xff]  ;;  %v324_v3 = vld [vmem:[%s936_s7 + $0x30] sm:$0xff]  ;;  %v325_v4 = vld [vmem:[%s936_s7 + $0x38] sm:$0xff] }
  0x21   :  { %611 = vmatprep.subr.bf16.mxu1 %v712_v1  ;;  %632 = vmatprep.subr.bf16.mxu0 %v712_v1  ;;  %v660_v5 = vpack.c.bf16 %v325_v4, %v324_v3  ;;  %v326_v6 = vld [vmem:[%s936_s7 + $0x40] sm:$0xff]  ;;  %v327_v7 = vld [vmem:[%s936_s7 + $0x48] sm:$0xff]  ;;  %v328_v9 = vld [vmem:[%s936_s7 + $0x50] sm:$0xff] }
  0x22   :  { %v663_v8 = vpack.c.bf16 %v327_v7, %v326_v6  ;;  %v329_v10 = vld [vmem:[%s936_s7 + $0x58] sm:$0xff]  ;;  %v330_v12 = vld [vmem:[%s936_s7 + $0x60] sm:$0xff]  ;;  %v331_v13 = vld [vmem:[%s936_s7 + $0x68] sm:$0xff] }
  0x23   :  { %v666_v11 = vpack.c.bf16 %v329_v10, %v328_v9  ;;  %v669_v14 = vpack.c.bf16 %v331_v13, %v330_v12  ;;  %v332_v20 = vld [vmem:[%s936_s7 + $0x70] sm:$0xff]  ;;  %v438_v28 = vld [vmem:[%s937_s8] ss:$0 sm:$0xff] }
  0x24   :  { %613 = vmatpush3.bf16.msra.mxu1 %v612_v15  ;;  %634 = vmatpush3.bf16.msra.mxu0 %v633_v36  ;;  %v436_v15 = vld [vmem:[%s933_s4] ss:$0 sm:$0xff] }
  0x25   :  { %614 = vmatprep.subr.bf16.mxu1 %v712_v1  ;;  %635 = vmatprep.subr.bf16.mxu0 %v712_v1 }
  0x28   :  { %616 = vmatpush3.bf16.msra.mxu1 %v615_v18  ;;  %637 = vmatpush3.bf16.msra.mxu0 %v636_v39 }
  0x29   :  { %617 = vmatprep.subr.bf16.mxu1 %v712_v1  ;;  %638 = vmatprep.subr.bf16.mxu0 %v712_v1 }
  0x2c   :  { %619 = vmatpush3.bf16.msra.mxu1 %v618_v21  ;;  %640 = vmatpush3.bf16.msra.mxu0 %v639_v42  ;;  %v333_v21 = vld [vmem:[%s936_s7 + $0x78] sm:$0xff] }
  0x2d   :  { %620 = vmatprep.subr.bf16.mxu1 %v712_v1  ;;  %641 = vmatprep.subr.bf16.mxu0 %v712_v1  ;;  %v672_v22 = vpack.c.bf16 %v333_v21, %v332_v20 }
  0x30   :  { %622 = vmatpush3.bf16.msra.mxu1 %v621_v24  ;;  %643 = vmatpush3.bf16.msra.mxu0 %v642_v45 }
  0x31   :  { %623 = vmatprep.subr.bf16.mxu1 %v712_v1  ;;  %644 = vmatprep.subr.bf16.mxu0 %v712_v1 }
  0x34   :  { %625 = vmatpush3.bf16.msra.mxu1 %v624_v27  ;;  %646 = vmatpush3.bf16.msra.mxu0 %v645_v48  ;;  %v713_v27 = vmov 4  }
  0x35   :  { %650 = vmatprep.subr.bf16.mxu1 %v712_v1  ;;  %647 = vmatprep.subr.bf16.mxu0 %v712_v1 }
  0x36   :  { %681 = vset.pattern.permute.xlu0 %v713_v27  ;;  %682 = vset.pattern.permute.xlu1 %v713_v27 }
  0x38   :  { %649 = vmatpush3.bf16.msra.mxu0 %v648_v56 }
  0xe9   :  { %v125_v50 = vpop.f32.mrb[0].mxu0 }
  0xea   :  { %v126_v51 = vadd.f32 %v434_v49, %v125_v50  ;;  %v496_v52 = vpop.f32.mrb[1].mxu0 }
  0xec   :  { %v129_v53 = vmax.f32 %v126_v51, 0.0 }
  0xee   :  { %530 = vmatmul.mubr.f32.vlgmr.msra.gmra.mrb[0].mxu1 %v129_v53 }
  0xef   :  { %599 = vmatprep.mubr.msk.f32.mxu1 %vm711_vm0, %v710_v0  ;;  %652 = vmatpush3.bf16.msra.mxu1 %v651_v60  ;;  %v323_v0 = vld [vmem:[%s936_s7 + $0x28] sm:$0xff] }
  0xf0   :  { %653 = vmatprep.subr.bf16.mxu1 %v712_v1  ;;  %v657_v2 = vpack.c.bf16 %v323_v0, %v322_v63 }
  0xf3   :  { %655 = vmatpush3.bf16.msra.mxu1 %v654_v62 }
  0xf4   :  { %656 = vmatprep.subr.bf16.mxu1 %v712_v1 }
  0xf7   :  { %658 = vmatpush3.bf16.msra.mxu1 %v657_v2 }
  0xf8   :  { %659 = vmatprep.subr.bf16.mxu1 %v712_v1 }
  0xfb   :  { %661 = vmatpush3.bf16.msra.mxu1 %v660_v5 }
  0xfc   :  { %662 = vmatprep.subr.bf16.mxu1 %v712_v1 }
  0xff   :  { %664 = vmatpush3.bf16.msra.mxu1 %v663_v8 }
 0x100   :  { %665 = vmatprep.subr.bf16.mxu1 %v712_v1 }
 0x103   :  { %667 = vmatpush3.bf16.msra.mxu1 %v666_v11 }
 0x104   :  { %668 = vmatprep.subr.bf16.mxu1 %v712_v1 }
 0x107   :  { %670 = vmatpush3.bf16.msra.mxu1 %v669_v14 }
 0x108   :  { %671 = vmatprep.subr.bf16.mxu1 %v712_v1  ;;  %v437_v1 = vld [vmem:[%s935_s6] ss:$0 sm:$0xff] }
 0x10b   :  { %673 = vmatpush3.bf16.msra.mxu1 %v672_v22 }
 0x1c1   :  { %v219_v16 = vpop.f32.mrb[0].mxu1 }
 0x1c2   :  { %v220_v17 = vadd.f32 %v436_v15, %v219_v16  ;;  %v531_v18 = vpop.f32.mrb[1].mxu1 }
 0x1c4   :  { %v223_v19 = vmax.f32 %v220_v17, 0.0 }
 0x1c6   :  { %565 = vmatmul.mubr.f32.vlgmr.msra.gmra.mrb[2].mxu0 %v223_v19 }
 0x299   :  { %v313_v23 = vpop.f32.mrb[2].mxu0 }
 0x29a   :  { %v314_v24 = vadd.f32 %v437_v1, %v313_v23  ;;  %v566_v25 = vpop.f32.mrb[3].mxu0 }
 0x29c   :  { %v317_v26 = vmax.f32 %v314_v24, 0.0 }
 0x29e   :  { %600 = vmatmul.mubr.f32.vlgmr.msra.gmra.mrb[2].mxu1 %v317_v26 }
 0x371   :  { %v407_v29 = vpop.f32.mrb[2].mxu1 }
 0x372   :  { %v408_v30 = vadd.f32 %v438_v28, %v407_v29  ;;  %v601_v31 = vpop.f32.mrb[3].mxu1 }
 0x374   :  { %v411_v32 = vsel %vm55_vm1, %v408_v30, 0.0 }
 0x375   :  { %412 = vadd.xlane.f32.xlu0 %v411_v32 }
 0x38b   :  { %418 = vperm.xlu0 %681, %v408_v30  }
 0x402   :  { %v413_v33 = vpop.xlane.xlu0 %412 }
 0x403   :  { %v414_v34 = vsub.f32 %v413_v33, %v408_v30 }
 0x405   :  { %v415_v35 = vmul.f32 0.25, %v414_v34 }
 0x407   :  { %424 = vperm.xlu1 %682, %v415_v35  }
 0x40a   :  { %v419_v36 = vpop.permute.xlu0 %418 }
 0x40b   :  { %v421_v37 = vadd.f32 %v419_v36, %v408_v30 }
 0x486   :  { %v425_v38 = vpop.permute.xlu1 %424 }
 0x487   :  { %v427_v39 = vsub.f32 %v421_v37, %v425_v38 }
 0x489   :  { %428 = vst.msk [vmem:[%s938_s9] sm:$0xff] %vm55_vm1, %v427_v39 }
 0x48a   :  { %433 = vsyncpa [#allocation3], 1 }

</bundles_post_ra>
